<compile_context>
chip_gen: v5e
topology: v5e:2x2
jax: 0.10.0
libtpu: 0.0.40
codegen_flags: <defaults>
</compile_context>

<pallas_src>
import functools
import math

import jax
import jax.numpy as jnp
from jax.experimental import pallas as pl
from jax.experimental.pallas import tpu as pltpu


def _sinusoidal_kernel(time_ref, freqs_ref, out_ref, *,
                       half_dim, tb, split_store, resident_time):
    # time_ref: (B_pad, 1) f32 resident  OR  (tb, 1) f32 per-tile
    # freqs_ref: (1, half_dim) f32 (resident across the grid)
    # out_ref:  (tb, dim)
    if resident_time:
        start = pl.multiple_of(pl.program_id(0) * tb, tb)
        t = time_ref[pl.ds(start, tb), :]              # (tb, 1)
    else:
        t = time_ref[...]                               # (tb, 1)

    args = t * freqs_ref[...]                           # (tb, half_dim) f32
    s = jnp.sin(args)                                    # VPU polynomial
    c = jnp.cos(args)

    if split_store:
        # half_dim % 128 == 0: both halves are lane-tile aligned -> two
        # unmasked full-width stores, no cross-lane shuffle needed.
        out_ref[:, :half_dim] = s.astype(out_ref.dtype)
        out_ref[:, half_dim:] = c.astype(out_ref.dtype)
    else:
        # Assemble the whole (tb, dim) row in registers and issue a single
        # lane-dense store (avoids two masked vst.msk partial stores).
        out_ref[...] = jnp.concatenate([s, c], axis=-1).astype(out_ref.dtype)


def _vmem_capacity_bytes():
    try:
        return int(pltpu.get_tpu_info().vmem_capacity_bytes)
    except Exception:  # be conservative if the query is unavailable
        return 64 * 1024 * 1024  # v7x per-TensorCore VMEM


def _pick_block_b(batch, dim, out_itemsize, vmem_cap):
    # Per-grid-step VMEM:
    #   2 * tb * dim * out_itemsize   (double-buffered output tile)
    # + ~2 * tb * dim * 4             (f32 temporaries: args, sin, cos, concat)
    # Budget ~1/4 of physical VMEM for this working set (generation-aware).
    budget = max(8 << 20, vmem_cap // 4)
    bytes_per_row = 2 * dim * out_itemsize + 2 * dim * 4
    max_tb = max(8, (budget // bytes_per_row) // 8 * 8)
    tb = min(8192, max_tb)
    # Ensure >=4 grid steps when the batch allows it so ("parallel",) can shard
    # across v7x's 2 TensorCores (a 1-step grid idles one TC).
    if batch >= 32:
        tb = min(tb, max(8, (pl.cdiv(batch, 4) // 8) * 8))
    return min(tb, batch)   # block == full extent is always legal


def _sinusoidal_pallas(time, dim, out_dtype=jnp.float32, block_b=None):
    assert dim % 2 == 0, "dim must be even (torch module concatenates sin/cos halves)"
    half_dim = dim // 2
    assert half_dim > 1, "dim must be >= 4: log(10000)/(half_dim-1) divides by zero"

    B = time.shape[0]
    out_itemsize = jnp.dtype(out_dtype).itemsize
    vmem_cap = _vmem_capacity_bytes()

    tb = block_b if block_b is not None else _pick_block_b(B, dim, out_itemsize, vmem_cap)
    tb = min(tb, B)
    num_tiles = pl.cdiv(B, tb)
    grid = (num_tiles,)

    # Frequency table (deterministic "parameter" setup; tiny, resident in VMEM).
    scale = math.log(10000.0) / (half_dim - 1)
    freqs = jnp.exp(jnp.arange(half_dim, dtype=jnp.float32) * -scale)
    freqs2d = freqs.reshape(1, half_dim)

    time2d = time.reshape(B, 1).astype(jnp.float32)

    # Keep the whole timestep column resident in VMEM when it is small (its
    # VMEM footprint is lane-padded to 128), and slice per-tile in-kernel.
    # Otherwise fall back to a per-tile BlockSpec DMA.
    B_pad = int(num_tiles) * tb
    resident_bytes = ((B_pad + 7) // 8) * 8 * 128 * 4
    resident_time = resident_bytes <= (4 << 20)
    if resident_time:
        if B_pad > B:
            time2d = jnp.pad(time2d, ((0, B_pad - B), (0, 0)))
        time_spec = pl.BlockSpec((B_pad, 1), lambda i: (0, 0))
    else:
        time_spec = pl.BlockSpec((tb, 1), lambda i: (i, 0))

    split_store = (half_dim % 128) == 0

    kernel = functools.partial(
        _sinusoidal_kernel,
        half_dim=half_dim, tb=tb,
        split_store=split_store, resident_time=resident_time)

    # sin/cos are VPU polynomials (~10-20 VALU ops/elem); advise the scheduler.
    cost = pl.CostEstimate(
        flops=16 * B * dim,
        transcendentals=B * dim,
        bytes_accessed=B * dim * out_itemsize + B * 4 + half_dim * 4,
    )

    # v5e/v6e (128 MiB VMEM): allow up to 64 MiB scoped; v7x (64 MiB): cap 48 MiB.
    vmem_limit = (64 << 20) if vmem_cap >= (100 << 20) else (48 << 20)

    return pl.pallas_call(
        kernel,
        out_shape=jax.ShapeDtypeStruct((B, dim), out_dtype),
        grid=grid,
        in_specs=[
            time_spec,                                        # timesteps
            pl.BlockSpec((1, half_dim), lambda i: (0, 0)),    # freqs, resident
        ],
        out_specs=pl.BlockSpec((tb, dim), lambda i: (i, 0)),
        compiler_params=pltpu.CompilerParams(
            dimension_semantics=("parallel",),                # shards across v7x's 2 TCs
            vmem_limit_bytes=vmem_limit,
        ),
        cost_estimate=cost,
    )(time2d, freqs2d)


def _reference(time, dim):
    half_dim = dim // 2
    scale = math.log(10000.0) / (half_dim - 1)
    freqs = jnp.exp(jnp.arange(half_dim, dtype=jnp.float32) * -scale)
    args = time.astype(jnp.float32)[:, None] * freqs[None, :]
    return jnp.concatenate([jnp.sin(args), jnp.cos(args)], axis=-1)


def sinusoidal_position_embeddings(time, dim, out_dtype=jnp.float32, *,
                                   block_b=None, force_pallas=False):
    """time: (B,) float array of timesteps. Returns (B, dim) embeddings.

    On bandwidth-poor parts (v5e) pass out_dtype=jnp.bfloat16 if the consumer
    accepts it; math stays f32 inside the kernel.
    """
    B = time.shape[0]
    out_bytes = B * dim * jnp.dtype(out_dtype).itemsize
    if not force_pallas and out_bytes < 256 * 1024:
        # Tiny outputs: fixed pallas_call overhead dominates; let XLA fuse the
        # exp/sin/cos straight into the consuming time-embedding MLP.
        return _reference(time, dim).astype(out_dtype)
    return _sinusoidal_pallas(time, dim, out_dtype, block_b)


if __name__ == "__main__":
    key = jax.random.PRNGKey(0)
    k1, k2 = jax.random.split(key)

    # Case 1: small shape implied by the module (B=8, dim=32), single tile,
    # lane-dense concat store path (half_dim=16 not a multiple of 128).
    B1, DIM1 = 8, 32
    t1 = jax.random.uniform(k1, (B1,), jnp.float32, minval=0.0, maxval=1000.0)
    out1 = jax.block_until_ready(
        sinusoidal_position_embeddings(t1, DIM1, force_pallas=True))
    ref1 = _reference(t1, DIM1)
    assert out1.shape == (B1, DIM1), out1.shape
    assert jnp.allclose(out1, ref1, atol=1e-3, rtol=1e-3), "mismatch vs reference (case 1)"

    # Case 2: exercise the batch grid (4 tiles of 8), resident-time in-kernel
    # slicing, and pipelined writeback.
    B2, DIM2 = 32, 32
    t2 = jax.random.uniform(k2, (B2,), jnp.float32, minval=0.0, maxval=1000.0)
    out2 = jax.block_until_ready(
        sinusoidal_position_embeddings(t2, DIM2, force_pallas=True, block_b=8))
    ref2 = _reference(t2, DIM2)
    assert out2.shape == (B2, DIM2), out2.shape
    assert jnp.allclose(out2, ref2, atol=1e-3, rtol=1e-3), "mismatch vs reference (case 2)"

    print("KERNEL_OK")
</pallas_src>

<mosaic_0001>
module attributes {stable_mosaic.version = 11 : i64} {
  func.func @_sinusoidal_kernel(%arg0: i32, %arg1: memref<8x1xf32, #tpu.memory_space<vmem>>, %arg2: memref<1x16xf32, #tpu.memory_space<vmem>>, %arg3: memref<8x32xf32, #tpu.memory_space<vmem>>) attributes {dimension_semantics = [#tpu.dimension_semantics<parallel>], iteration_bounds = array<i64: 1>, scalar_prefetch = 0 : i64, scratch_operands = 0 : i64, tpu.core_type = #tpu.core_type<tc>, window_params = [{pipeline_mode = #tpu.pipeline_mode<synchronous>, transform_indices = @transform_0, window_bounds = array<i64: 8, 1>}, {pipeline_mode = #tpu.pipeline_mode<synchronous>, transform_indices = @transform_1, window_bounds = array<i64: 1, 16>}, {transform_indices = @transform_2, window_bounds = array<i64: 8, 32>}]} {
    %c8_i32 = arith.constant 8 : i32
    %0 = arith.muli %arg0, %c8_i32 : i32
    %1 = tpu.assume_multiple %0, 8 : i32
    %2 = arith.index_cast %1 : i32 to index
    %c0 = arith.constant 0 : index
    %3 = vector.load %arg1[%2, %c0] : memref<8x1xf32, #tpu.memory_space<vmem>>, vector<8x1xf32>
    %c0_0 = arith.constant 0 : index
    %c0_1 = arith.constant 0 : index
    %4 = vector.load %arg2[%c0_0, %c0_1] : memref<1x16xf32, #tpu.memory_space<vmem>>, vector<1x16xf32>
    %5 = vector.broadcast %3 : vector<8x1xf32> to vector<8x16xf32>
    %6 = vector.broadcast %4 : vector<1x16xf32> to vector<8x16xf32>
    %7 = arith.mulf %5, %6 : vector<8x16xf32>
    %8 = math.sin %7 : vector<8x16xf32>
    %9 = math.cos %7 : vector<8x16xf32>
    %10 = tpu.concatenate %8, %9 in 1 : vector<8x16xf32>, vector<8x16xf32> -> vector<8x32xf32>
    %c0_2 = arith.constant 0 : index
    %c0_3 = arith.constant 0 : index
    %11 = vector.load %arg3[%c0_2, %c0_3] : memref<8x32xf32, #tpu.memory_space<vmem>>, vector<8x32xf32>
    tpu.vector_store %arg3[%c0_2, %c0_3], %10 {strides = array<i32>} : memref<8x32xf32, #tpu.memory_space<vmem>>, vector<8x32xf32>,
    return
  }
  func.func @transform_0(%arg0: i32) -> (i32, i32) {
    %c0_i32 = arith.constant 0 : i32
    %c0_i32_0 = arith.constant 0 : i32
    %c0_i32_1 = arith.constant 0 : i32
    return %c0_i32, %c0_i32_0 : i32, i32
  }
  func.func @transform_1(%arg0: i32) -> (i32, i32) {
    %c0_i32 = arith.constant 0 : i32
    %c0_i32_0 = arith.constant 0 : i32
    %c0_i32_1 = arith.constant 0 : i32
    return %c0_i32, %c0_i32_0 : i32, i32
  }
  func.func @transform_2(%arg0: i32) -> (i32, i32) {
    %c0_i32 = arith.constant 0 : i32
    %c0_i32_0 = arith.constant 0 : i32
    return %arg0, %c0_i32 : i32, i32
  }
}

</mosaic_0001>

<bundles_post_ra>
// kernel: tpu_custom_call.1
= control target key start
LH: loop header
LB: loop body
LE: loop exit
PB: predicated region body
PF: predicated region fallthrough
CT: control target
= control target key end

     0   :  { %v401_v1 = vmov 0   ;;  %s485_s0 = inlined_call_operand.vmem [shape: f32[8,1], index: 0, kind: input, shape index: {}]   ;;  %s486_s1 = inlined_call_operand.vmem [shape: f32[1,16], index: 1, kind: input, shape index: {}]   ;;  %s487_s2 = inlined_call_operand.hbm [shape: f32[8,32], index: 2, kind: output, shape index: {}]  }
   0x1   :  { %v14_v0 = vld [vmem:[%s485_s0] sm:$0xff]  ;;  %373 = vset.pattern.permute.xlu0 %v401_v1 }
   0x2   :  { %18 = vperm.xlu0 %373, %v14_v0  }
   0x3   :  { %7 = vsyncpa [#allocation3], 0  ;;  %v374_v2 = vld [vmem:[%s486_s1] ss:$0 sm:$0xff]  ;;  %v402_v16 = vmov 683565275  }
   0x4   :  { %v403_v18 = vmov 2475754826   ;;  %v404_v20 = vmov 2131351028   ;;  %v405_v22 = vmov 2102212464  }
   0x5   :  { %v406_v27 = vmov 920167782   ;;  %v407_v30 = vmov 1326507024   ;;  %s408_s0 = smov 16   ;;  %s409_s1 = smov [#allocation2]  }
   0x6   :  { %s347_s13 = sshll.u32 %s409_s1, 4  ;;  %s349_s16 = sshll.u32 %s487_s2, 4  ;;  %s348_s13 = int_to_ptr.vmem [resolvable:$true] %s347_s13  ;;  %s350_s16 = int_to_ptr.hbm [resolvable:$true] %s349_s16 }
  0x74   :  { %v19_v3 = vpop.permute.xlu0 %18 }
  0x75   :  { %v432_v4 = vmul.f32 %v374_v2, %v19_v3 }
  0x77   :  { %v28_v5 = vand.u32 2139095040, %v432_v4  ;;  %v25_v7 = vand.u32 2147483647, %v432_v4  ;;  %vm27_vm12 = vcmp.lt.s32.totalorder %v432_v4, 0 }
  0x79   :  { %v29_v6 = vshrl.u32 %v28_v5, 23  ;;  %v32_v10 = vand.u32 8388607, %v25_v7  ;;  %vm26_vm13 = vcmp.le.f32.partialorder %v25_v7, 0.7853982 }
  0x7b   :  { %v358_v8 = vadd.s32 4294967169, %v29_v6  ;;  %v33_v13 = vor.u32 8388608, %v32_v10 }
  0x7d   :  { %v35_v9 = vadd.s32 1, %v358_v8  ;;  %v440_v32 = vshll.u32 %v33_v13, 8 }
  0x7f   :  { %vm36_vm0 = vcmp.gt.s32.totalorder %v35_v9, 0  ;;  %v74_v44 = vand.u32 65535, %v440_v32  ;;  %v75_v46 = vshrl.u32 %v440_v32, 16 }
  0x80   :  { %v37_v11 = vsel %vm36_vm0, %v35_v9, 0 }
  0x81   :  { %v39_v12 = vand.u32 31, %v37_v11  ;;  %v438_v14 = vshrl.u32 %v37_v11, 5 }
  0x83   :  { %v40_v15 = vsub.s32 32, %v39_v12  ;;  %v42_v17 = vshll.u32 %v402_v16, %v39_v12  ;;  %v45_v19 = vshll.u32 %v403_v18, %v39_v12  ;;  %v48_v21 = vshll.u32 %v404_v20, %v39_v12 }
  0x84   :  { %v51_v23 = vshll.u32 %v405_v22, %v39_v12  ;;  %v54_v29 = vshll.u32 %v406_v27, %v39_v12  ;;  %vm57_vm1 = vcmp.lt.s32.totalorder %v438_v14, 1  ;;  %vm60_vm2 = vcmp.lt.s32.totalorder %v438_v14, 4 }
  0x85   :  { %v43_v24 = vshrl.u32 %v403_v18, %v40_v15  ;;  %v46_v25 = vshrl.u32 %v404_v20, %v40_v15  ;;  %v49_v26 = vshrl.u32 %v405_v22, %v40_v15  ;;  %v52_v28 = vshrl.u32 %v406_v27, %v40_v15 }
  0x86   :  { %v55_v31 = vshrl.u32 %v407_v30, %v40_v15  ;;  %vm59_vm3 = vcmp.lt.s32.totalorder %v438_v14, 3  ;;  %vm58_vm4 = vcmp.lt.s32.totalorder %v438_v14, 2  ;;  %v41_v9 = vshrl.u32 %v402_v16, %v40_v15 }
  0x87   :  { %v44_v33 = vor.u32 %v43_v24, %v42_v17  ;;  %v47_v34 = vor.u32 %v46_v25, %v45_v19  ;;  %v50_v35 = vor.u32 %v49_v26, %v48_v21  ;;  %v53_v36 = vor.u32 %v52_v28, %v51_v23 }
  0x88   :  { %v56_v37 = vor.u32 %v55_v31, %v54_v29 }
  0x89   :  { %v65_v38 = vsel %vm57_vm1, %v44_v33, %v47_v34  ;;  %v66_v39 = vsel %vm60_vm2, %v53_v36, 920167782  ;;  %v69_v40 = vsel %vm57_vm1, %v47_v34, %v50_v35  ;;  %v62_v5 = vsel %vm60_vm2, %v50_v35, 2102212464 }
  0x8a   :  { %v67_v41 = vsel %vm59_vm3, %v50_v35, %v66_v39  ;;  %v70_v42 = vsel %vm60_vm2, %v56_v37, 1326507024  ;;  %v61_v18 = vsel %vm57_vm1, %v41_v9, %v44_v33  ;;  %v63_v19 = vsel %vm59_vm3, %v47_v34, %v62_v5 }
  0x8b   :  { %v71_v43 = vsel %vm59_vm3, %v53_v36, %v70_v42  ;;  %v68_v45 = vsel %vm58_vm4, %v65_v38, %v67_v41  ;;  %v64_v16 = vsel %vm58_vm4, %v61_v18, %v63_v19 }
  0x8c   :  { %v72_v47 = vsel %vm58_vm4, %v69_v40, %v71_v43  ;;  %v98_v48 = vand.u32 65535, %v68_v45  ;;  %v99_v49 = vshrl.u32 %v68_v45, 16  ;;  %v118_v28 = vmul.u32 %v440_v32, %v64_v16 }
  0x8d   :  { %v76_v50 = vand.u32 65535, %v72_v47  ;;  %v77_v51 = vshrl.u32 %v72_v47, 16  ;;  %vm168_vm4 = vweird.f32 %v432_v4 }
  0x8e   :  { %v101_v52 = vmul.u32 %v99_v49, %v74_v44  ;;  %v102_v53 = vmul.u32 %v98_v48, %v75_v46  ;;  %v100_v56 = vmul.u32 %v98_v48, %v74_v44  ;;  %v103_v60 = vmul.u32 %v99_v49, %v75_v46 }
  0x8f   :  { %v79_v54 = vmul.u32 %v77_v51, %v74_v44  ;;  %v80_v55 = vmul.u32 %v76_v50, %v75_v46  ;;  %v78_v58 = vmul.u32 %v76_v50, %v74_v44  ;;  %v81_v61 = vmul.u32 %v77_v51, %v75_v46 }
  0x90   :  { %v104_v57 = vshll.u32 %v101_v52, 16  ;;  %v106_v62 = vshll.u32 %v102_v53, 16  ;;  %v105_v13 = vshrl.u32 %v101_v52, 16  ;;  %v107_v22 = vshrl.u32 %v102_v53, 16 }
  0x91   :  { %v82_v59 = vshll.u32 %v79_v54, 16  ;;  %v84_v0 = vshll.u32 %v80_v55, 16  ;;  %v83_v20 = vshrl.u32 %v79_v54, 16  ;;  %v85_v24 = vshrl.u32 %v80_v55, 16 }
  0x92   :  { %vm108_vm5 = vc.u32 %v100_v56, %v104_v57  ;;  %v110_v63 = vadd.s32 %v104_v57, %v100_v56 }
  0x93   :  { %vm86_vm6 = vc.u32 %v78_v58, %v82_v59  ;;  %v88_v2 = vadd.s32 %v82_v59, %v78_v58  ;;  %v109_v3 = vsel %vm108_vm5, 1, %v401_v1  ;;  %vm338_vm5 = vcmask 130048  }
  0x94   :  { %v87_v6 = vsel %vm86_vm6, 1, %v401_v1  ;;  %v111_v8 = vadd.s32 %v109_v3, %v103_v60  ;;  %vm112_vm7 = vc.u32 %v110_v63, %v106_v62  ;;  %vm340_vm6 = vcmask 261120  }
  0x95   :  { %v89_v10 = vadd.s32 %v87_v6, %v81_v61  ;;  %vm90_vm8 = vc.u32 %v88_v2, %v84_v0  ;;  %v113_v11 = vsel %vm112_vm7, 1, %v401_v1 }
  0x96   :  { %v91_v12 = vsel %vm90_vm8, 1, %v401_v1  ;;  %v115_v17 = vadd.s32 %v113_v11, %v111_v8  ;;  %v114_v1 = vadd.s32 %v110_v63, %v106_v62 }
  0x97   :  { %v93_v21 = vadd.s32 %v91_v12, %v89_v10 }
  0x98   :  { %v116_v23 = vadd.s32 %v115_v17, %v105_v13 }
  0x99   :  { %v94_v15 = vadd.s32 %v93_v21, %v83_v20 }
  0x9a   :  { %v117_v25 = vadd.s32 %v116_v23, %v107_v22 }
  0x9b   :  { %v95_v26 = vadd.s32 %v94_v15, %v85_v24 }
  0x9c   :  { %v121_v27 = vadd.s32 1, %v117_v25 }
  0x9d   :  { %vm120_vm9 = vc.u32 %v95_v26, %v114_v1  ;;  %v119_v40 = vadd.s32 %v114_v1, %v95_v26 }
  0x9e   :  { %v122_v29 = vsel %vm120_vm9, %v121_v27, %v117_v25 }
  0x9f   :  { %v123_v30 = vadd.s32 %v122_v29, %v118_v28 }
  0xa1   :  { %v124_v31 = vadd.s32 536870912, %v123_v30 }
  0xa3   :  { %v125_v33 = vshrl.u32 %v124_v31, 30 }
  0xa5   :  { %v126_v34 = vshll.u32 %v125_v33, 30  ;;  %v149_v52 = vsub.s32 4, %v125_v33 }
  0xa7   :  { %v127_v35 = vsub.s32 %v123_v30, %v126_v34  ;;  %v150_v56 = vsel %vm27_vm12, %v149_v52, %v125_v33 }
  0xa8   :  { %v152_v59 = vsel %vm26_vm13, 0, %v150_v56 }
  0xa9   :  { %vm128_vm10 = vcmp.lt.s32.totalorder %v127_v35, 0  ;;  %v129_v36 = vsub.s32 0, %v127_v35  ;;  %v169_v0 = vadd.s32 3, %v152_v59  ;;  %v324_v10 = vand.u32 3, %v152_v59 }
  0xab   :  { %v130_v37 = vsel %vm128_vm10, %v129_v36, %v127_v35  ;;  %v170_v8 = vand.u32 3, %v169_v0  ;;  %vm325_vm0 = vcmp.lt.s32.totalorder %v324_v10, 2  ;;  %vm326_vm1 = vcmp.eq.s32.totalorder %v324_v10, 0 }
  0xac   :  { %v131_v38 = vclz %v130_v37  ;;  %vm329_vm2 = vcmp.eq.s32.totalorder %v324_v10, 2 }
  0xad   :  { %vm175_vm14 = vcmp.eq.s32.totalorder %v170_v8, 2  ;;  %vm172_vm15 = vcmp.eq.s32.totalorder %v170_v8, 0  ;;  %vm171_vm3 = vcmp.lt.s32.totalorder %v170_v8, 2 }
  0xae   :  { %v359_v39 = vadd.s32 4294967294, %v131_v38 }
  0xb0   :  { %vm360_vm11 = vcmp.lt.s32.totalorder %v359_v39, 0 }
  0xb1   :  { %v134_v14 = vsel %vm360_vm11, 0, %v359_v39 }
  0xb2   :  { %v135_v41 = vsub.s32 32, %v134_v14  ;;  %v139_v42 = vsub.s32 4294967266, %v134_v14  ;;  %v136_v43 = vshll.u32 %v127_v35, %v134_v14 }
  0xb4   :  { %v137_v44 = vshrl.u32 %v119_v40, %v135_v41  ;;  %v140_v32 = vadd.s32 127, %v139_v42 }
  0xb6   :  { %v138_v45 = vor.u32 %v137_v44, %v136_v43  ;;  %v141_v46 = vshll.u32 %v140_v32, 23 }
  0xb8   :  { %v142_v47 = vor.u32 4788187, %v141_v46  ;;  %v145_v49 = vcvt.s32.f32 %v138_v45 }
  0xba   :  { %v143_v48 = vand.u32 2147483647, %v142_v47 }
  0xbc   :  { %v146_v50 = vmul.f32 %v145_v49, %v143_v48 }
  0xbe   :  { %v147_v51 = vxor.u32 2147483648, %v146_v50 }
  0xc0   :  { %v148_v53 = vsel %vm27_vm12, %v147_v51, %v146_v50 }
  0xc1   :  { %v151_v54 = vsel %vm26_vm13, %v432_v4, %v148_v53 }
  0xc2   :  { %v153_v55 = vmul.f32 %v151_v54, %v151_v54 }
  0xc4   :  { %v154_v57 = vmul.f32 -0.001358992, %v153_v55  ;;  %v161_v58 = vmul.f32 -0.00019511016, %v153_v55 }
  0xc6   :  { %v155_v60 = vadd.f32 0.041655596, %v154_v57  ;;  %v162_v61 = vadd.f32 0.008332121, %v161_v58 }
  0xc8   :  { %v156_v62 = vmul.f32 %v155_v60, %v153_v55  ;;  %v163_v63 = vmul.f32 %v162_v61, %v153_v55 }
  0xca   :  { %v157_v2 = vadd.f32 -0.4999988, %v156_v62  ;;  %v164_v3 = vadd.f32 -0.16666654, %v163_v63 }
  0xcc   :  { %v158_v5 = vmul.f32 %v157_v2, %v153_v55  ;;  %v165_v6 = vmul.f32 %v164_v3, %v153_v55 }
  0xce   :  { %v159_v9 = vadd.f32 1.0, %v158_v5  ;;  %v166_v7 = vadd.f32 1.0, %v165_v6 }
  0xd0   :  { %v167_v11 = vmul.f32 %v166_v7, %v151_v54  ;;  %v176_v12 = vxor.u32 2147483648, %v159_v9 }
  0xd2   :  { %v173_v13 = vxor.u32 2147483648, %v167_v11  ;;  %v177_v17 = vsel %vm175_vm14, %v176_v12, %v167_v11  ;;  %v331_v19 = vsel %vm329_vm2, %v176_v12, %v167_v11 }
  0xd4   :  { %v328_v18 = vsel %vm326_vm1, %v159_v9, %v173_v13  ;;  %v174_v20 = vsel %vm172_vm15, %v159_v9, %v173_v13 }
  0xd5   :  { %v332_v21 = vsel %vm325_vm0, %v328_v18, %v331_v19  ;;  %v178_v22 = vsel %vm171_vm3, %v174_v20, %v177_v17 }
  0xd6   :  { %v333_v23 = vsel %vm168_vm4, nan, %v332_v21  ;;  %v179_v24 = vsel %vm168_vm4, nan, %v178_v22 }
  0xd7   :  { %335 = vrot.lane.b32.xlu0 %v333_v23, %s408_s0 }
 0x149   :  { %v336_v15 = vpop.permute.xlu0 %335 }
 0x14a   :  { %v339_v16 = vsel %vm338_vm5, %v179_v24, %v336_v15 }
 0x14b   :  { %341 = vst.msk [vmem:[#allocation2] sm:$0xff] %vm340_vm6, %v339_v16 }
 0x14c   :  { %352 = dma.vmem_to_hbm [thread:$0]  %s348_s13, 128, %s350_s16, [#allocation3]  }
 0x14d   :  { %399 = dma.done.wait [#allocation3], 128  }
 0x14e   :  { %400 = vsyncadd [#allocation3], 4294967168 }
 0x14f   :  { %357 = vsyncpa [#allocation3], 1 }

</bundles_post_ra>
